<compile_context>
chip_gen: v5e
topology: v5e:2x2
jax: 0.10.0
libtpu: 0.0.40
codegen_flags: <defaults>
</compile_context>

<pallas_src>
import jax
import jax.numpy as jnp
from jax.experimental import pallas as pl
from jax.experimental.pallas import tpu as pltpu

NUM_USER_FEATURES = 31
NUM_OUTPUTS = 64
H1 = 256
H2 = 128

MAX_TILE_B = 2048      # batch tile cap; VMEM is never the constraint here
SPLIT_THRESHOLD = 256  # only split into >=2 grid steps when each half >=128 rows


def usernn_kernel(x_ref, w1_ref, b1_ref, w2_ref, b2_ref, w3_ref, b3_ref, o_ref):
    # Fused 3-layer MLP: relu(relu(x @ W1 + b1) @ W2 + b2) @ W3 + b3
    # x / W* / b1 / b2 are bf16; matmul accumulation is f32 on the MXU; the
    # hidden bias-add + ReLU run in bf16 to keep intermediates half-width.
    x = x_ref[...]
    h1 = jnp.dot(x, w1_ref[...], preferred_element_type=jnp.float32)
    h1 = jnp.maximum(h1.astype(jnp.bfloat16) + b1_ref[...], 0)
    h2 = jnp.dot(h1, w2_ref[...], preferred_element_type=jnp.float32)
    h2 = jnp.maximum(h2.astype(jnp.bfloat16) + b2_ref[...], 0)
    out = jnp.dot(h2, w3_ref[...], preferred_element_type=jnp.float32) + b3_ref[...]
    o_ref[...] = out.astype(o_ref.dtype)


def _round_up(a: int, m: int) -> int:
    return (a + m - 1) // m * m


def _cdiv(a: int, b: int) -> int:
    return (a + b - 1) // b


def _pick_tile(b16: int) -> int:
    """Pick a batch tile: multiple of 16, <= MAX_TILE_B, >=2 grid steps for
    large batches (v7x megacore), preferring an exact divisor of b16 so no
    padding / post-slice copy is needed."""
    if b16 <= MAX_TILE_B:
        tile = _round_up(_cdiv(b16, 2), 16) if b16 >= SPLIT_THRESHOLD else b16
    else:
        tile = MAX_TILE_B
    if b16 % tile != 0:
        for cand in range(tile - 16, 0, -16):
            if b16 % cand == 0 and cand >= min(512, b16):
                return cand
    return tile


def usernn_forward(x, params, out_dtype=jnp.float32):
    w1, b1, w2, b2, w3, b3 = params
    B = x.shape[0]

    # bf16 weights/activations/hidden-biases, f32 accumulation + final bias.
    xb = x.astype(jnp.bfloat16)
    w1b = w1.astype(jnp.bfloat16)
    w2b = w2.astype(jnp.bfloat16)
    w3b = w3.astype(jnp.bfloat16)
    b1b = b1.astype(jnp.bfloat16)
    b2b = b2.astype(jnp.bfloat16)
    b3f = b3.astype(jnp.float32)

    b16 = _round_up(B, 16)
    tile_b = _pick_tile(b16)
    b_pad = _round_up(b16, tile_b)
    if b_pad != B:
        xb = jnp.pad(xb, ((0, b_pad - B), (0, 0)))

    grid = (b_pad // tile_b,)

    def resident(a):
        # Whole array, same block every grid step -> stays VMEM-resident.
        nd = a.ndim
        return pl.BlockSpec(a.shape, lambda i, _nd=nd: (0,) * _nd)

    flops = 2 * b_pad * (NUM_USER_FEATURES * H1 + H1 * H2 + H2 * NUM_OUTPUTS)
    bytes_accessed = (
        b_pad * NUM_USER_FEATURES * 2                              # x (bf16)
        + b_pad * NUM_OUTPUTS * jnp.dtype(out_dtype).itemsize      # out
        + (NUM_USER_FEATURES * H1 + H1 * H2 + H2 * NUM_OUTPUTS) * 2  # W (bf16)
        + (H1 + H2) * 2 + NUM_OUTPUTS * 4                          # biases
    )

    out = pl.pallas_call(
        usernn_kernel,
        out_shape=jax.ShapeDtypeStruct((b_pad, NUM_OUTPUTS), out_dtype),
        grid=grid,
        in_specs=[
            pl.BlockSpec((tile_b, NUM_USER_FEATURES), lambda i: (i, 0)),
            resident(w1b), resident(b1b),
            resident(w2b), resident(b2b),
            resident(w3b), resident(b3f),
        ],
        out_specs=pl.BlockSpec((tile_b, NUM_OUTPUTS), lambda i: (i, 0)),
        compiler_params=pltpu.CompilerParams(
            dimension_semantics=("parallel",),
        ),
        cost_estimate=pl.CostEstimate(
            flops=flops, transcendentals=0, bytes_accessed=bytes_accessed
        ),
    )(xb, w1b, b1b, w2b, b2b, w3b, b3f)

    return out[:B] if b_pad != B else out


def init_params(key):
    """Deterministic init mimicking nn.Linear's U(-1/sqrt(fan_in), 1/sqrt(fan_in))."""
    ks = jax.random.split(key, 6)

    def linear(kw, kb, fan_in, fan_out):
        bound = 1.0 / jnp.sqrt(float(fan_in))
        w = jax.random.uniform(kw, (fan_in, fan_out), jnp.float32, -bound, bound)
        b = jax.random.uniform(kb, (1, fan_out), jnp.float32, -bound, bound)
        return w, b

    w1, b1 = linear(ks[0], ks[1], NUM_USER_FEATURES, H1)
    w2, b2 = linear(ks[2], ks[3], H1, H2)
    w3, b3 = linear(ks[4], ks[5], H2, NUM_OUTPUTS)
    return (w1, b1, w2, b2, w3, b3)


def usernn_reference(x, params):
    """Pure-JAX reference mirroring the kernel's bf16/f32 dtype choices.
    (bf16 weights deviate ~1e-2 relative from the f32 PyTorch model; keep f32
    weights end-to-end if exact parity is required.)"""
    w1, b1, w2, b2, w3, b3 = params
    xb = x.astype(jnp.bfloat16)
    h1 = jnp.dot(xb, w1.astype(jnp.bfloat16), preferred_element_type=jnp.float32)
    h1 = jnp.maximum(h1.astype(jnp.bfloat16) + b1.astype(jnp.bfloat16), 0)
    h2 = jnp.dot(h1, w2.astype(jnp.bfloat16), preferred_element_type=jnp.float32)
    h2 = jnp.maximum(h2.astype(jnp.bfloat16) + b2.astype(jnp.bfloat16), 0)
    return (
        jnp.dot(h2, w3.astype(jnp.bfloat16), preferred_element_type=jnp.float32)
        + b3.astype(jnp.float32)
    )


if __name__ == "__main__":
    key = jax.random.PRNGKey(0)
    k_params, k_x1, k_x2, k_x3 = jax.random.split(key, 4)
    params = init_params(k_params)

    # Primary small test (batch=8 -> padded to one 16-row tile, grid=(1,)).
    batch = 8
    x = jax.random.normal(k_x1, (batch, NUM_USER_FEATURES), jnp.float32)
    out = jax.block_until_ready(usernn_forward(x, params))
    ref = usernn_reference(x, params)
    assert out.shape == (batch, NUM_OUTPUTS)
    assert jnp.allclose(out, ref, atol=1e-2, rtol=1e-2)

    # Ragged batch (B=37 -> padded to 48, single tile, post-slice path).
    batch2 = 37
    x2 = jax.random.normal(k_x2, (batch2, NUM_USER_FEATURES), jnp.float32)
    out2 = jax.block_until_ready(usernn_forward(x2, params))
    ref2 = usernn_reference(x2, params)
    assert out2.shape == (batch2, NUM_OUTPUTS)
    assert jnp.allclose(out2, ref2, atol=1e-2, rtol=1e-2)

    # Multi-step grid test (B=384 -> tile_b=192, grid=(2,), no pad/slice).
    batch3 = 384
    x3 = jax.random.normal(k_x3, (batch3, NUM_USER_FEATURES), jnp.float32)
    out3 = jax.block_until_ready(usernn_forward(x3, params))
    ref3 = usernn_reference(x3, params)
    assert out3.shape == (batch3, NUM_OUTPUTS)
    assert jnp.allclose(out3, ref3, atol=1e-2, rtol=1e-2)

    print("KERNEL_OK")
</pallas_src>

<mosaic_0001>
module attributes {stable_mosaic.version = 11 : i64} {
  func.func @usernn_kernel(%arg0: i32, %arg1: memref<16x31xbf16, #tpu.memory_space<vmem>>, %arg2: memref<31x256xbf16, #tpu.memory_space<vmem>>, %arg3: memref<1x256xbf16, #tpu.memory_space<vmem>>, %arg4: memref<256x128xbf16, #tpu.memory_space<vmem>>, %arg5: memref<1x128xbf16, #tpu.memory_space<vmem>>, %arg6: memref<128x64xbf16, #tpu.memory_space<vmem>>, %arg7: memref<1x64xf32, #tpu.memory_space<vmem>>, %arg8: memref<16x64xf32, #tpu.memory_space<vmem>>) attributes {dimension_semantics = [#tpu.dimension_semantics<parallel>], iteration_bounds = array<i64: 1>, scalar_prefetch = 0 : i64, scratch_operands = 0 : i64, tpu.core_type = #tpu.core_type<tc>, window_params = [{transform_indices = @transform_0, window_bounds = array<i64: 16, 31>}, {pipeline_mode = #tpu.pipeline_mode<synchronous>, transform_indices = @transform_1, window_bounds = array<i64: 31, 256>}, {pipeline_mode = #tpu.pipeline_mode<synchronous>, transform_indices = @transform_2, window_bounds = array<i64: 1, 256>}, {pipeline_mode = #tpu.pipeline_mode<synchronous>, transform_indices = @transform_3, window_bounds = array<i64: 256, 128>}, {pipeline_mode = #tpu.pipeline_mode<synchronous>, transform_indices = @transform_4, window_bounds = array<i64: 1, 128>}, {pipeline_mode = #tpu.pipeline_mode<synchronous>, transform_indices = @transform_5, window_bounds = array<i64: 128, 64>}, {pipeline_mode = #tpu.pipeline_mode<synchronous>, transform_indices = @transform_6, window_bounds = array<i64: 1, 64>}, {transform_indices = @transform_7, window_bounds = array<i64: 16, 64>}]} {
    %c0 = arith.constant 0 : index
    %c0_0 = arith.constant 0 : index
    %0 = vector.load %arg1[%c0, %c0_0] : memref<16x31xbf16, #tpu.memory_space<vmem>>, vector<16x31xbf16>
    %c0_1 = arith.constant 0 : index
    %c0_2 = arith.constant 0 : index
    %1 = vector.load %arg2[%c0_1, %c0_2] : memref<31x256xbf16, #tpu.memory_space<vmem>>, vector<31x256xbf16>
    %cst = arith.constant dense<0.000000e+00> : vector<16x256xf32>
    %2 = tpu.matmul %0, %1, %cst {dimension_numbers = #tpu.dot_dimension_numbers<[1], [0], [0], [1], [0, 0, 1, 1], [], []>} : vector<16x31xbf16>, vector<31x256xbf16>, vector<16x256xf32> -> vector<16x256xf32>
    %3 = arith.truncf %2 : vector<16x256xf32> to vector<16x256xbf16>
    %c0_3 = arith.constant 0 : index
    %c0_4 = arith.constant 0 : index
    %4 = vector.load %arg3[%c0_3, %c0_4] : memref<1x256xbf16, #tpu.memory_space<vmem>>, vector<1x256xbf16>
    %5 = vector.broadcast %4 : vector<1x256xbf16> to vector<16x256xbf16>
    %6 = arith.addf %3, %5 : vector<16x256xbf16>
    %cst_5 = arith.constant 0.000000e+00 : bf16
    %7 = vector.broadcast %cst_5 : bf16 to vector<16x256xbf16>
    %8 = arith.maximumf %6, %7 : vector<16x256xbf16>
    %c0_6 = arith.constant 0 : index
    %c0_7 = arith.constant 0 : index
    %9 = vector.load %arg4[%c0_6, %c0_7] : memref<256x128xbf16, #tpu.memory_space<vmem>>, vector<256x128xbf16>
    %cst_8 = arith.constant dense<0.000000e+00> : vector<16x128xf32>
    %10 = tpu.matmul %8, %9, %cst_8 {dimension_numbers = #tpu.dot_dimension_numbers<[1], [0], [0], [1], [0, 0, 1, 1], [], []>} : vector<16x256xbf16>, vector<256x128xbf16>, vector<16x128xf32> -> vector<16x128xf32>
    %11 = arith.truncf %10 : vector<16x128xf32> to vector<16x128xbf16>
    %c0_9 = arith.constant 0 : index
    %c0_10 = arith.constant 0 : index
    %12 = vector.load %arg5[%c0_9, %c0_10] : memref<1x128xbf16, #tpu.memory_space<vmem>>, vector<1x128xbf16>
    %13 = vector.broadcast %12 : vector<1x128xbf16> to vector<16x128xbf16>
    %14 = arith.addf %11, %13 : vector<16x128xbf16>
    %cst_11 = arith.constant 0.000000e+00 : bf16
    %15 = vector.broadcast %cst_11 : bf16 to vector<16x128xbf16>
    %16 = arith.maximumf %14, %15 : vector<16x128xbf16>
    %c0_12 = arith.constant 0 : index
    %c0_13 = arith.constant 0 : index
    %17 = vector.load %arg6[%c0_12, %c0_13] : memref<128x64xbf16, #tpu.memory_space<vmem>>, vector<128x64xbf16>
    %cst_14 = arith.constant dense<0.000000e+00> : vector<16x64xf32>
    %18 = tpu.matmul %16, %17, %cst_14 {dimension_numbers = #tpu.dot_dimension_numbers<[1], [0], [0], [1], [0, 0, 1, 1], [], []>} : vector<16x128xbf16>, vector<128x64xbf16>, vector<16x64xf32> -> vector<16x64xf32>
    %c0_15 = arith.constant 0 : index
    %c0_16 = arith.constant 0 : index
    %19 = vector.load %arg7[%c0_15, %c0_16] : memref<1x64xf32, #tpu.memory_space<vmem>>, vector<1x64xf32>
    %20 = vector.broadcast %19 : vector<1x64xf32> to vector<16x64xf32>
    %21 = arith.addf %18, %20 : vector<16x64xf32>
    %c0_17 = arith.constant 0 : index
    %c0_18 = arith.constant 0 : index
    %22 = vector.load %arg8[%c0_17, %c0_18] : memref<16x64xf32, #tpu.memory_space<vmem>>, vector<16x64xf32>
    tpu.vector_store %arg8[%c0_17, %c0_18], %21 {strides = array<i32>} : memref<16x64xf32, #tpu.memory_space<vmem>>, vector<16x64xf32>,
    return
  }
  func.func @transform_0(%arg0: i32) -> (i32, i32) {
    %c0_i32 = arith.constant 0 : i32
    %c0_i32_0 = arith.constant 0 : i32
    return %arg0, %c0_i32 : i32, i32
  }
  func.func @transform_1(%arg0: i32) -> (i32, i32) {
    %c0_i32 = arith.constant 0 : i32
    %c0_i32_0 = arith.constant 0 : i32
    %c0_i32_1 = arith.constant 0 : i32
    return %c0_i32, %c0_i32_0 : i32, i32
  }
  func.func @transform_2(%arg0: i32) -> (i32, i32) {
    %c0_i32 = arith.constant 0 : i32
    %c0_i32_0 = arith.constant 0 : i32
    %c0_i32_1 = arith.constant 0 : i32
    return %c0_i32, %c0_i32_0 : i32, i32
  }
  func.func @transform_3(%arg0: i32) -> (i32, i32) {
    %c0_i32 = arith.constant 0 : i32
    %c0_i32_0 = arith.constant 0 : i32
    %c0_i32_1 = arith.constant 0 : i32
    return %c0_i32, %c0_i32_0 : i32, i32
  }
  func.func @transform_4(%arg0: i32) -> (i32, i32) {
    %c0_i32 = arith.constant 0 : i32
    %c0_i32_0 = arith.constant 0 : i32
    %c0_i32_1 = arith.constant 0 : i32
    return %c0_i32, %c0_i32_0 : i32, i32
  }
  func.func @transform_5(%arg0: i32) -> (i32, i32) {
    %c0_i32 = arith.constant 0 : i32
    %c0_i32_0 = arith.constant 0 : i32
    %c0_i32_1 = arith.constant 0 : i32
    return %c0_i32, %c0_i32_0 : i32, i32
  }
  func.func @transform_6(%arg0: i32) -> (i32, i32) {
    %c0_i32 = arith.constant 0 : i32
    %c0_i32_0 = arith.constant 0 : i32
    %c0_i32_1 = arith.constant 0 : i32
    return %c0_i32, %c0_i32_0 : i32, i32
  }
  func.func @transform_7(%arg0: i32) -> (i32, i32) {
    %c0_i32 = arith.constant 0 : i32
    %c0_i32_0 = arith.constant 0 : i32
    return %arg0, %c0_i32 : i32, i32
  }
}

</mosaic_0001>

<bundles_post_ra>
// kernel: tpu_custom_call.1
= control target key start
LH: loop header
LB: loop body
LE: loop exit
PB: predicated region body
PF: predicated region fallthrough
CT: control target
= control target key end

     0   :  { %12 = vsyncpa [#allocation3], 0  ;;  %s749_s0 = inlined_call_operand.vmem [shape: bf16[16,31], index: 0, kind: input, shape index: {}]   ;;  %s750_s1 = inlined_call_operand.vmem [shape: bf16[31,256], index: 1, kind: input, shape index: {}]   ;;  %s751_s2 = inlined_call_operand.vmem [shape: bf16[1,256], index: 2, kind: input, shape index: {}]   ;;  %s752_s3 = inlined_call_operand.hbm [shape: bf16[256,128], index: 3, kind: input, shape index: {}]   ;;  %s753_s4 = inlined_call_operand.vmem [shape: bf16[1,128], index: 4, kind: input, shape index: {}]   ;;  %s754_s5 = inlined_call_operand.vmem [shape: bf16[128,64], index: 5, kind: input, shape index: {}]   ;;  %s755_s6 = inlined_call_operand.vmem [shape: f32[1,64], index: 6, kind: input, shape index: {}]   ;;  %s756_s7 = inlined_call_operand.hbm [shape: f32[16,64], index: 7, kind: output, shape index: {}]  }
   0x1   :  { %13 = vsyncpa [#allocation4], 0  ;;  %s24_s26 = sshll.u32 %s752_s3, 4  ;;  %s636_s27 = smov [#allocation2]   ;;  %s25_s26 = int_to_ptr.hbm [resolvable:$true] %s24_s26 }
   0x2   :  { %s26_s28 = sshll.u32 %s636_s27, 4  ;;  %s637_s29 = smov 64   ;;  %s27_s28 = int_to_ptr.vmem [resolvable:$true] %s26_s28 }
   0x3   :  { %s638_s30 = smov 4  }
   0x4   :  { %32 = dma.hbm_to_vmem [thread:$0]  %s25_s26, 2048, %s27_s28, [#allocation3], %s637_s29, %s637_s29, %s638_s30  }
   0x5   :  { %632 = dma.done.wait [#allocation3], 2048  }
   0x6   :  { %633 = vsyncadd [#allocation3], 4294965248  ;;  %vm77_vm0 = vcmask 1046528   ;;  %vm78_vm1 = vcmask 1047552   ;;  %v639_v0 = vmov 65535   ;;  %v547_v16 = vld [vmem:[%s749_s0] sm:$0xff] }
   0x7   :  { %v79_v1 = vsel %vm77_vm0, 4294967295, %v639_v0  ;;  %v443_v2 = vld [vmem:[%s750_s1 + $0x10] sm:$0xf]  ;;  %v551_v3 = vld [vmem:[%s750_s1 + $0x14] sm:$0xf0]  ;;  %vm73_vm2 = vcmask 252928  }
   0x8   :  { %v80_v4 = vsel %vm78_vm1, %v79_v1, 0  ;;  %v444_v5 = vor.u32 %v551_v3, %v443_v2  ;;  %v550_v6 = vld [vmem:[%s750_s1 + $0x14] sm:$0xf]  ;;  %v435_v7 = vld [vmem:[%s750_s1] sm:$0xf]  ;;  %v558_v20 = vld [vmem:[#allocation2 + $0x30] sm:$0xff] }
   0x9   :  { %v549_v8 = vld [vmem:[%s750_s1 + $0x4] sm:$0xf0]  ;;  %v445_v9 = vld [vmem:[%s750_s1 + $0x18] sm:$0xf0]  ;;  %v548_v14 = vld [vmem:[%s750_s1 + $0x4] sm:$0xf] }
   0xa   :  { %v82_v10 = vand.u32 %v444_v5, %v80_v4  ;;  %v448_v11 = vor.u32 %v550_v6, %v445_v9  ;;  %v436_v12 = vor.u32 %v549_v8, %v435_v7  ;;  %v437_v15 = vld [vmem:[%s750_s1 + $0x8] sm:$0xf0]  ;;  %v559_v18 = vld [vmem:[#allocation2 + $0x38] sm:$0xff]  ;;  %v566_v21 = vld [vmem:[#allocation2 + $0x70] sm:$0xff]  ;;  %vm407_vm3 = vcmask 523264   ;;  %s640_s18 = smov [#allocation5]  }
   0xb   :  { %v440_v17 = vor.u32 %v548_v14, %v437_v15  ;;  %v567_v19 = vld [vmem:[#allocation2 + $0x78] sm:$0xff]  ;;  %278 = vmatpush.bf16.msra.mxu2 %v559_v18  ;;  %v557_v23 = vld [vmem:[#allocation2 + $0x28] sm:$0xff]  ;;  %v556_v25 = vld [vmem:[#allocation2 + $0x20] sm:$0xff]  ;;  %s414_s19 = sshll.u32 %s640_s18, 4  ;;  %s416_s22 = sshll.u32 %s756_s7, 4  ;;  %s415_s19 = int_to_ptr.vmem [resolvable:$true] %s414_s19  ;;  %s417_s22 = int_to_ptr.hbm [resolvable:$true] %s416_s22 }
   0xc   :  { %93 = vmatpush.bf16.msra.mxu1 %v82_v10  ;;  %v85_v13 = vand.u32 %v448_v11, %v80_v4  ;;  %292 = vmatpush.bf16.msra.mxu3 %v567_v19  ;;  %v117_v22 = vld [vmem:[%s751_s2] sm:$0x3]  ;;  %v565_v24 = vld [vmem:[#allocation2 + $0x68] sm:$0xff]  ;;  %v564_v26 = vld [vmem:[#allocation2 + $0x60] sm:$0xff]  ;;  %s641_s23 = smov 128   ;;  %s642_s24 = smov 8  }
   0xd   :  { %119 = vst [vmem:[#allocation1] ss:$9 sm:$0xff] %v117_v22  ;;  %v555_v27 = vld [vmem:[#allocation2 + $0x18] sm:$0xff]  ;;  %v554_v29 = vld [vmem:[#allocation2 + $0x10] sm:$0xff]  ;;  %v553_v31 = vld [vmem:[#allocation2 + $0x8] sm:$0xff] }
   0xe   :  { %v563_v28 = vld [vmem:[#allocation2 + $0x58] sm:$0xff]  ;;  %v562_v30 = vld [vmem:[#allocation2 + $0x50] sm:$0xff]  ;;  %v561_v32 = vld [vmem:[#allocation2 + $0x48] sm:$0xff] }
   0xf   :  { %279 = vmatpush.bf16.msra.mxu2 %v558_v20  ;;  %v552_v33 = vld [vmem:[#allocation2] sm:$0xff]  ;;  %v575_v36 = vld [vmem:[%s754_s5 + $0x38] sm:$0xff]  ;;  %v574_v37 = vld [vmem:[%s754_s5 + $0x30] sm:$0xff] }
  0x10   :  { %94 = vmatpush.bf16.msra.mxu1 %v436_v12  ;;  %293 = vmatpush.bf16.msra.mxu3 %v566_v21  ;;  %v560_v34 = vld [vmem:[#allocation2 + $0x40] sm:$0xff]  ;;  %v572_v2 = vld [vmem:[%s754_s5 + $0x20] sm:$0xff]  ;;  %v571_v3 = vld [vmem:[%s754_s5 + $0x18] sm:$0xff] }
  0x11   :  { %393 = vmatpush.bf16.msra.mxu0 %v575_v36  ;;  %v573_v39 = vld [vmem:[%s754_s5 + $0x28] sm:$0xff]  ;;  %v570_v4 = vld [vmem:[%s754_s5 + $0x10] sm:$0xff]  ;;  %v568_v6 = vld [vmem:[%s754_s5] sm:$0xff] }
  0x12   :  { %v569_v5 = vld [vmem:[%s754_s5 + $0x8] sm:$0xff]  ;;  %v308_v7 = vld [vmem:[%s753_s4] sm:$0x1] }
  0x13   :  { %449 = vmatmul.msk.bf16.vlgmr.msra.gmra.mxu1 %vm73_vm2, %v547_v16  ;;  %280 = vmatpush.bf16.msra.mxu2 %v557_v23  ;;  %v310_v11 = vpack.i.b16 %v308_v7, %v308_v7 }
  0x14   :  { %107 = vmatpush.bf16.msrb.mxu1 %v85_v13  ;;  %294 = vmatpush.bf16.msra.mxu3 %v565_v24  ;;  %v120_v40 = vld [vmem:[#allocation1] sm:$0xff]  ;;  %v121_v41 = vld [vmem:[#allocation1 + $0x9] sm:$0xff] }
  0x15   :  { %394 = vmatpush.bf16.msra.mxu0 %v574_v37  ;;  %v122_v42 = vpack.i.b16 %v120_v40, %v120_v40  ;;  %v125_v43 = vpack.i.b16 %v121_v41, %v121_v41  ;;  %v312_v13 = vperm.slane %v310_v11, 0 }
  0x17   :  { %281 = vmatpush.bf16.msra.mxu2 %v556_v25  ;;  %v124_v46 = vperm.slane %v122_v42, 0  ;;  %v127_v47 = vperm.slane %v125_v43, 0 }
  0x18   :  { %108 = vmatpush.bf16.msrb.mxu1 %v440_v17  ;;  %295 = vmatpush.bf16.msra.mxu3 %v564_v26  ;;  %v315_v17 = vunpack.c.l.bf16 %v312_v13  ;;  %v583_v26 = vld [vmem:[%s755_s6] ss:$0 sm:$0xff] }
  0x19   :  { %395 = vmatpush.bf16.msra.mxu0 %v573_v39  ;;  %v132_v50 = vunpack.c.l.bf16 %v124_v46  ;;  %v133_v51 = vunpack.c.l.bf16 %v127_v47 }
  0x1b   :  { %282 = vmatpush.bf16.msra.mxu2 %v555_v27 }
  0x1c   :  { %296 = vmatpush.bf16.msra.mxu3 %v563_v28 }
  0x1d   :  { %396 = vmatpush.bf16.msra.mxu0 %v572_v2 }
  0x1f   :  { %283 = vmatpush.bf16.msra.mxu2 %v554_v29 }
  0x20   :  { %297 = vmatpush.bf16.msra.mxu3 %v562_v30 }
  0x21   :  { %397 = vmatpush.bf16.msra.mxu0 %v571_v3 }
  0x23   :  { %450 = vmatmul.msk.bf16.vlgmr.msrb.gmra.mxu1 %vm73_vm2, %v547_v16  ;;  %284 = vmatpush.bf16.msra.mxu2 %v553_v31 }
  0x24   :  { %298 = vmatpush.bf16.msra.mxu3 %v561_v32 }
  0x25   :  { %398 = vmatpush.bf16.msra.mxu0 %v570_v4 }
  0x27   :  { %285 = vmatpush.bf16.msra.mxu2 %v552_v33 }
  0x28   :  { %299 = vmatpush.bf16.msra.mxu3 %v560_v34 }
  0x29   :  { %399 = vmatpush.bf16.msra.mxu0 %v569_v5 }
  0x2d   :  { %400 = vmatpush.bf16.msra.mxu0 %v568_v6 }
  0x90   :  { %v96_v35 = vpop.f32.mrf.mxu1 }
  0x98   :  { %v98_v38 = vpop.f32.mrf.mxu1 }
  0xa0   :  { %v110_v44 = vpop.f32.mrf.mxu1 }
  0xa1   :  { %v115_v45 = vpack.c.bf16 %v110_v44, %v96_v35 }
  0xa3   :  { %v128_v48 = vunpack.c.l.bf16 %v115_v45  ;;  %v129_v49 = vunpack.c.h.bf16 %v115_v45 }
  0xa5   :  { %v134_v56 = vadd.f32 %v132_v50, %v128_v48  ;;  %v135_v57 = vadd.f32 %v133_v51, %v129_v49 }
  0xa7   :  { %v144_v60 = vmax.f32 %v134_v56, 0.0  ;;  %v145_v62 = vmax.f32 %v135_v57, 0.0 }
  0xa8   :  { %v112_v52 = vpop.f32.mrf.mxu1 }
  0xa9   :  { %v116_v53 = vpack.c.bf16 %v112_v52, %v98_v38 }
  0xab   :  { %v130_v54 = vunpack.c.l.bf16 %v116_v53  ;;  %v131_v55 = vunpack.c.h.bf16 %v116_v53 }
  0xad   :  { %v136_v58 = vadd.f32 %v132_v50, %v130_v54  ;;  %v137_v59 = vadd.f32 %v133_v51, %v131_v55 }
  0xaf   :  { %v146_v61 = vmax.f32 %v136_v58, 0.0  ;;  %v147_v63 = vmax.f32 %v137_v59, 0.0 }
  0xb1   :  { %v148_v0 = vpack.c.bf16 %v146_v61, %v144_v60  ;;  %v149_v1 = vpack.c.bf16 %v147_v63, %v145_v62 }
  0xb3   :  { %286 = vmatmul.bf16.vlgmr.msra.gmra.mxu2 %v148_v0  ;;  %300 = vmatmul.bf16.vlgmr.msra.gmra.mxu3 %v149_v1 }
 0x136   :  { %v287_v8 = vpop.f32.mrf.mxu2  ;;  %v301_v9 = vpop.f32.mrf.mxu3 }
 0x137   :  { %v302_v10 = vadd.f32 %v301_v9, %v287_v8 }
 0x139   :  { %v306_v12 = vpack.c.bf16 %v302_v10, %v302_v10 }
 0x13b   :  { %v313_v16 = vunpack.c.l.bf16 %v306_v12 }
 0x13d   :  { %v316_v20 = vadd.f32 %v315_v17, %v313_v16 }
 0x13e   :  { %v289_v14 = vpop.f32.mrf.mxu2  ;;  %v303_v15 = vpop.f32.mrf.mxu3 }
 0x13f   :  { %v304_v18 = vadd.f32 %v303_v15, %v289_v14  ;;  %v322_v23 = vmax.f32 %v316_v20, 0.0 }
 0x141   :  { %v307_v19 = vpack.c.bf16 %v304_v18, %v304_v18 }
 0x143   :  { %v314_v21 = vunpack.c.l.bf16 %v307_v19 }
 0x145   :  { %v317_v22 = vadd.f32 %v315_v17, %v314_v21 }
 0x147   :  { %v323_v24 = vmax.f32 %v317_v22, 0.0 }
 0x149   :  { %v324_v25 = vpack.c.bf16 %v323_v24, %v322_v23 }
 0x14b   :  { %401 = vmatmul.bf16.vlgmr.msra.gmra.mxu0 %v324_v25 }
 0x1c8   :  { %v402_v27 = vpop.f32.mrf.mxu0 }
 0x1c9   :  { %v403_v28 = vadd.f32 %v583_v26, %v402_v27 }
 0x1cb   :  { %408 = vst.msk [vmem:[#allocation5] sm:$0xff] %vm407_vm3, %v403_v28 }
 0x1d0   :  { %v404_v29 = vpop.f32.mrf.mxu0 }
 0x1d1   :  { %v405_v30 = vadd.f32 %v583_v26, %v404_v29 }
 0x1d3   :  { %409 = vst.msk [vmem:[#allocation5 + $0x8] sm:$0xff] %vm407_vm3, %v405_v30 }
 0x1d4   :  { %422 = dma.vmem_to_hbm [thread:$0]  %s415_s19, 256, %s417_s22, [#allocation4], %s641_s23, %s641_s23, %s642_s24  }
 0x1d5   :  { %634 = dma.done.wait [#allocation4], 256  }
 0x1d6   :  { %635 = vsyncadd [#allocation4], 4294967040 }
 0x1d7   :  { %427 = vsyncpa [#allocation3], 1 }
 0x1d8   :  { %428 = vsyncpa [#allocation4], 1 }

</bundles_post_ra>
